<compile_context>
chip_gen: v5e
topology: v5e:2x2
jax: 0.10.0
libtpu: 0.0.40
codegen_flags: <defaults>
</compile_context>

<pallas_src>
import functools

import jax
import jax.numpy as jnp
from jax.experimental import pallas as pl
from jax.experimental.pallas import tpu as pltpu

MIN_NORM = 1e-15
EPS = 1e-7
# Explicit scoped-VMEM cap: above the 16/32 MiB defaults, with headroom on
# v7x's 64 MiB physical VMEM (v5e/v6e have 128 MiB).
_VMEM_LIMIT = 48 * 1024 * 1024


def _tile(n, cap, mult):
    """Largest multiple of `mult` <= cap that divides n; else the full dim n."""
    best = None
    t = mult
    while t <= min(n, cap):
        if n % t == 0:
            best = t
        t += mult
    return best if best is not None else n


# ----------------------------------------------------------------------------
# In-kernel hyperboloid-manifold helpers (elementwise + row reductions; the
# exp/log/sqrt land on the EUP slot and are nearly free once data is in VMEM).
# ----------------------------------------------------------------------------
def _arcosh(x):
    return jnp.log(x + jnp.sqrt(jnp.maximum(x * x - 1.0, MIN_NORM)))


def _hyp_expmap0_proj(u, c):
    """proj(expmap0(u)).  expmap0 only reads the spatial part (cols >= 1),
    matching the reference manifold (so no proj_tan0 is required on r_s/r_t)."""
    K = 1.0 / c
    sqrtK = K ** 0.5
    col = jax.lax.broadcasted_iota(jnp.int32, u.shape, 1)
    is_time = col == 0
    x = jnp.where(is_time, 0.0, u)
    x_norm = jnp.maximum(jnp.sqrt(jnp.sum(x * x, axis=-1, keepdims=True)), MIN_NORM)
    theta = x_norm / sqrtK
    ex = jnp.exp(theta)
    sinh = 0.5 * (ex - 1.0 / ex)
    y_space = sqrtK * sinh * x / x_norm            # column 0 stays 0
    y_sq = jnp.sum(y_space * y_space, axis=-1, keepdims=True)
    y_time = jnp.sqrt(jnp.maximum(K + y_sq, EPS))  # proj of the time component
    return jnp.where(is_time, y_time, y_space)


def _hyp_roundtrip_tan0(h, c):
    """proj_tan0(logmap0(proj(expmap0(proj_tan0(h)))))  -- psi_1 epilogue."""
    K = 1.0 / c
    sqrtK = K ** 0.5
    col = jax.lax.broadcasted_iota(jnp.int32, h.shape, 1)
    is_time = col == 0
    y = _hyp_expmap0_proj(h, c)                    # expmap0 ignores h[:, 0]
    y_space = jnp.where(is_time, 0.0, y)
    y_norm = jnp.maximum(
        jnp.sqrt(jnp.sum(y_space * y_space, axis=-1, keepdims=True)), MIN_NORM)
    theta = jnp.maximum(y[:, 0:1] / sqrtK, 1.0 + EPS)
    out = sqrtK * _arcosh(theta) * y_space / y_norm
    return jnp.where(is_time, 0.0, out)


# ----------------------------------------------------------------------------
# Pallas kernels
# ----------------------------------------------------------------------------
def _gnn_kernel(a_ref, x_ref, w_ref, b_ref, o_ref, acc_ref, *, hyperbolic, c):
    kk = pl.program_id(2)

    @pl.when(kk == 0)
    def _():
        acc_ref[...] = jnp.zeros_like(acc_ref)

    # bf16 A/X tiles, f32 accumulation on the MXU.
    acc_ref[...] += jnp.dot(a_ref[0], x_ref[0], preferred_element_type=jnp.float32)

    @pl.when(kk == pl.num_programs(2) - 1)
    def _():
        h = jnp.dot(acc_ref[...], w_ref[...],
                    preferred_element_type=jnp.float32) + b_ref[...]
        h = jnp.maximum(h, 0.0)
        if hyperbolic:
            # Fused psi_1 epilogue: hyperboloid map and back to the tangent
            # space at the origin, without extra HBM round trips.
            h = _hyp_roundtrip_tan0(h, c)
        o_ref[0] = h


def gnn_layer(A, X, W, b, *, hyperbolic=False, c=1.0):
    """relu((A @ X) @ W + b) for a stack of G graphs (A, X given in bf16).

    grid = (graphs, row tiles, K tiles); the output tile is resident across the
    K (reduction) axis via the f32 VMEM accumulator; reduction axis is last and
    marked 'arbitrary', the other axes 'parallel' (megacore / v7x 2-TC sharding).
    """
    G, n, _ = A.shape
    Cin = X.shape[-1]
    Cout = W.shape[1]
    tm = _tile(n, 256, 8)     # <=256 rows keeps the working set v7x-friendly
    tk = _tile(n, 512, 128)
    kernel = functools.partial(_gnn_kernel, hyperbolic=hyperbolic, c=c)
    return pl.pallas_call(
        kernel,
        out_shape=jax.ShapeDtypeStruct((G, n, Cout), jnp.float32),
        grid=(G, n // tm, n // tk),
        in_specs=[
            # TODO(synk): on v5e consider pipeline_mode=pl.Buffered(3) on this
            # A BlockSpec if the bundle dump shows exposed DMA waits.
            pl.BlockSpec((1, tm, tk), lambda g, m, kk: (g, m, kk)),
            pl.BlockSpec((1, tk, Cin), lambda g, m, kk: (g, kk, 0)),
            pl.BlockSpec((Cin, Cout), lambda g, m, kk: (0, 0)),
            pl.BlockSpec((1, Cout), lambda g, m, kk: (0, 0)),
        ],
        out_specs=pl.BlockSpec((1, tm, Cout), lambda g, m, kk: (g, m, 0)),
        scratch_shapes=[pltpu.VMEM((tm, Cin), jnp.float32)],
        compiler_params=pltpu.CompilerParams(
            dimension_semantics=("parallel", "parallel", "arbitrary"),
            vmem_limit_bytes=_VMEM_LIMIT),
    )(A, X, W, b.reshape(1, Cout))


def _score_kernel(hs_ref, ht_ref, o_ref):
    hs = hs_ref[0]  # (TM, C) bf16
    ht = ht_ref[0]  # (TN, C) bf16
    col = jax.lax.broadcasted_iota(jnp.int32, hs.shape, 1)
    # Negating the time column folds the "- 2 * outer(time)" term into the same
    # MXU matmul -> a single (N_s, N_t) output instead of two.
    hs = jnp.where(col == 0, -hs, hs)
    o_ref[0] = jax.lax.dot_general(hs, ht, (((1,), (1,)), ((), ())),
                                   preferred_element_type=jnp.float32)


def score_topk_matrix(h_s, h_t):
    """Stop[b,i,j] = <h_s[b,i], h_t[b,j]> - 2 * h_s[b,i,0] * h_t[b,j,0]."""
    B, N_s, C = h_s.shape
    N_t = h_t.shape[1]
    tm = _tile(N_s, 256, 8)
    tn = _tile(N_t, 512, 128)
    return pl.pallas_call(
        _score_kernel,
        out_shape=jax.ShapeDtypeStruct((B, N_s, N_t), jnp.float32),
        grid=(B, N_s // tm, N_t // tn),
        in_specs=[
            pl.BlockSpec((1, tm, C), lambda b, i, j: (b, i, 0)),
            pl.BlockSpec((1, tn, C), lambda b, i, j: (b, j, 0)),
        ],
        out_specs=pl.BlockSpec((1, tm, tn), lambda b, i, j: (b, i, j)),
        compiler_params=pltpu.CompilerParams(
            dimension_semantics=("parallel", "parallel", "parallel"),
            vmem_limit_bytes=_VMEM_LIMIT),
    )(h_s.astype(jnp.bfloat16), h_t.astype(jnp.bfloat16))
    # TODO(synk): for very large N a streaming in-kernel top-k accumulator would
    # avoid writing the full (B, N_s, N_t) matrix; lax.top_k stays in XLA here.


def _softmax_kernel(x_ref, o_ref):
    x = x_ref[0]
    m = jnp.max(x, axis=-1, keepdims=True)
    e = jnp.exp(x - m)
    o_ref[0] = e / jnp.sum(e, axis=-1, keepdims=True)


def softmax_last(x):
    B, N_s, k = x.shape
    return pl.pallas_call(
        _softmax_kernel,
        out_shape=jax.ShapeDtypeStruct((B, N_s, k), jnp.float32),
        grid=(B,),
        in_specs=[pl.BlockSpec((1, N_s, k), lambda b: (b, 0, 0))],
        out_specs=pl.BlockSpec((1, N_s, k), lambda b: (b, 0, 0)),
        compiler_params=pltpu.CompilerParams(
            dimension_semantics=("parallel",),
            vmem_limit_bytes=_VMEM_LIMIT),
    )(x)


def _prep_kernel(shat_ref, rs_ref, ptk_ref, rsh_ref, rth_ref, *, c, k):
    s_hat = shat_ref[0]                               # (N_s, k) f32
    r_s = rs_ref[0]                                   # (N_s, R_in) f32
    # fused softmax over the k candidates (no per-step HBM round trip)
    m = jnp.max(s_hat, axis=-1, keepdims=True)
    e = jnp.exp(s_hat - m)
    s = e / jnp.sum(e, axis=-1, keepdims=True)
    # scatter-add replaced by MXU matmuls against the precomputed one-hots:
    #   r_t[t, :] = sum_{i, j : S_idx[i, j] == t} s[i, j] * r_s[i, :]
    n_t = ptk_ref.shape[2]
    r_t = jnp.zeros((n_t, r_s.shape[1]), jnp.float32)
    for j in range(k):                                # k is small and static
        w = (s[:, j:j + 1] * r_s).astype(jnp.bfloat16)
        r_t = r_t + jnp.dot(ptk_ref[0, j], w, preferred_element_type=jnp.float32)
    # fused expmap0 + proj for both r_s and r_t
    rsh_ref[0] = _hyp_expmap0_proj(r_s, c)
    rth_ref[0] = _hyp_expmap0_proj(r_t, c)


def consensus_prep(S_hat, r_s, PT_k, *, c, k):
    B, N_s, _ = S_hat.shape
    R_in = r_s.shape[-1]
    N_t = PT_k.shape[2]
    kernel = functools.partial(_prep_kernel, c=c, k=k)
    return pl.pallas_call(
        kernel,
        out_shape=(jax.ShapeDtypeStruct((B, N_s, R_in), jnp.float32),
                   jax.ShapeDtypeStruct((B, N_t, R_in), jnp.float32)),
        grid=(B,),
        in_specs=[
            pl.BlockSpec((1, N_s, k), lambda b: (b, 0, 0)),
            pl.BlockSpec((1, N_s, R_in), lambda b: (b, 0, 0)),
            pl.BlockSpec((1, k, N_t, N_s), lambda b: (b, 0, 0, 0)),
        ],
        out_specs=(
            pl.BlockSpec((1, N_s, R_in), lambda b: (b, 0, 0)),
            pl.BlockSpec((1, N_t, R_in), lambda b: (b, 0, 0)),
        ),
        compiler_params=pltpu.CompilerParams(
            dimension_semantics=("parallel",),
            vmem_limit_bytes=_VMEM_LIMIT),
    )(S_hat, r_s, PT_k)


def _update_kernel(shat_ref, os_ref, ot_ref, gk_ref, w1_ref, b1_ref, w2_ref,
                   b2_ref, out_ref, *, k):
    s_hat = shat_ref[0]                               # (N_s, k) f32
    o_s = os_ref[0]                                   # (N_s, R) f32
    o_t = ot_ref[0].astype(jnp.bfloat16)              # (N_t, R)
    w1 = w1_ref[...]                                  # (R, H)
    b1 = b1_ref[...]                                  # (1, H)
    w2 = w2_ref[...]                                  # (1, H) row
    b2 = b2_ref[...]                                  # (1, 1)
    col = jax.lax.broadcasted_iota(jnp.int32, s_hat.shape, 1)
    upd = jnp.zeros_like(s_hat)
    for j in range(k):                                # k is small and static
        # gather-by-matmul: rows of o_t selected by S_idx[:, j]
        otg = jnp.dot(gk_ref[0, j], o_t, preferred_element_type=jnp.float32)
        d = o_s - otg                                 # o_s replicated in VMEM only
        h = jnp.maximum(jnp.dot(d, w1, preferred_element_type=jnp.float32) + b1,
                        0.0)
        # (H x 1) projection as a VPU multiply+reduce instead of a padded MXU dot
        z = jnp.sum(h * w2, axis=-1, keepdims=True) + b2
        upd = upd + jnp.where(col == j, z, 0.0)
    # output is only B*N_s*k values; the matmuls above dominate this kernel.
    out_ref[0] = s_hat + upd


def consensus_update(S_hat, o_s, o_t, G_k, w1, b1, w2, b2, *, k):
    B, N_s, _ = S_hat.shape
    N_t, R = o_t.shape[1], o_t.shape[2]
    H = w1.shape[1]
    kernel = functools.partial(_update_kernel, k=k)
    return pl.pallas_call(
        kernel,
        out_shape=jax.ShapeDtypeStruct((B, N_s, k), jnp.float32),
        grid=(B,),
        in_specs=[
            pl.BlockSpec((1, N_s, k), lambda b: (b, 0, 0)),
            pl.BlockSpec((1, N_s, R), lambda b: (b, 0, 0)),
            pl.BlockSpec((1, N_t, R), lambda b: (b, 0, 0)),
            pl.BlockSpec((1, k, N_s, N_t), lambda b: (b, 0, 0, 0)),
            pl.BlockSpec((R, H), lambda b: (0, 0)),
            pl.BlockSpec((1, H), lambda b: (0, 0)),
            pl.BlockSpec((1, H), lambda b: (0, 0)),
            pl.BlockSpec((1, 1), lambda b: (0, 0)),
        ],
        out_specs=pl.BlockSpec((1, N_s, k), lambda b: (b, 0, 0)),
        compiler_params=pltpu.CompilerParams(
            dimension_semantics=("parallel",),
            vmem_limit_bytes=_VMEM_LIMIT),
    )(S_hat, o_s, o_t, G_k, w1, b1.reshape(1, H), w2.reshape(1, H),
      b2.reshape(1, 1))


# ----------------------------------------------------------------------------
# Graph glue
# ----------------------------------------------------------------------------
def build_adj(edge_index, n):
    # dense row-normalized adjacency with exactly one self loop per node
    A = jnp.zeros((n, n), jnp.float32).at[edge_index[1], edge_index[0]].add(1.0)
    eye = jnp.eye(n, dtype=jnp.float32)
    A = A * (1.0 - eye) + eye
    deg = jnp.maximum(jnp.sum(A, axis=1, keepdims=True), 1.0)
    return A / deg


# ----------------------------------------------------------------------------
# HDGMC_ver1 forward
# ----------------------------------------------------------------------------
def hdgmc_ver1_forward(params, x_s, edge_index_s, batch_s, x_t, edge_index_t,
                       batch_t, *, B, N, k, num_steps, key):
    del batch_s, batch_t  # uniform batches assumed (each graph has exactly N nodes)
    c = params["c"]
    n_tot = x_s.shape[0]
    A_s = build_adj(edge_index_s, n_tot)
    A_t = build_adj(edge_index_t, n_tot)
    # source + target stacked on a leading 'parallel' grid axis; bf16 MXU inputs
    A_stack = jnp.stack([A_s, A_t]).astype(jnp.bfloat16)        # reused every step

    # psi_1 (Pallas GCN) with fused hyperbolic round-trip epilogue
    X1 = jnp.stack([x_s, x_t]).astype(jnp.bfloat16)
    H1 = gnn_layer(A_stack, X1, params["psi1_w"], params["psi1_b"],
                   hyperbolic=True, c=c)                        # (2, n_tot, C_out)
    C_out = H1.shape[-1]
    h_s_d = H1[0].reshape(B, N, C_out)
    h_t_d = H1[1].reshape(B, N, C_out)
    N_s = N_t = N

    # __top_k__ scores: single fused Pallas matmul (time column folded in)
    Stop = score_topk_matrix(h_s_d, h_t_d)                      # (B, N_s, N_t)
    _, S_idx = jax.lax.top_k(Stop, k)                           # (B, N_s, k)
    # S_hat == plain inner products: gathered Stop + 2 * time-component correction
    ht0_g = jax.vmap(lambda v, idx: v[idx])(h_t_d[..., 0], S_idx)
    S_hat = (jnp.take_along_axis(Stop, S_idx, axis=-1)
             + 2.0 * h_s_d[..., 0:1] * ht0_g)
    S_0 = softmax_last(S_hat).reshape(B * N_s, k)

    # Fixed one-hot selection matrices (S_idx does not change inside the loop):
    # used to turn the per-step scatter-add / gather into MXU matmuls.
    onehot = (S_idx[..., None] ==
              jnp.arange(N_t, dtype=S_idx.dtype)[None, None, None, :])
    onehot = onehot.astype(jnp.bfloat16)                        # (B, N_s, k, N_t)
    G_k = jnp.transpose(onehot, (0, 2, 1, 3))                   # (B, k, N_s, N_t)
    PT_k = jnp.transpose(onehot, (0, 2, 3, 1))                  # (B, k, N_t, N_s)

    R_in = params["psi2_w"].shape[0]
    R_out = params["psi2_w"].shape[1]

    for _ in range(num_steps):
        key, sub = jax.random.split(key)
        r_s = jax.random.normal(sub, (B, N_s, R_in), dtype=jnp.float32)

        # fused: softmax(S_hat) -> scatter-as-matmul -> expmap0 + proj
        r_s_hyp, r_t_hyp = consensus_prep(S_hat, r_s, PT_k, c=c, k=k)

        # psi_2 (Pallas GCN), source and target in one stacked call
        X2 = jnp.stack([r_s_hyp.reshape(n_tot, R_in),
                        r_t_hyp.reshape(n_tot, R_in)]).astype(jnp.bfloat16)
        O2 = gnn_layer(A_stack, X2, params["psi2_w"], params["psi2_b"], c=c)
        o_s = O2[0].reshape(B, N_s, R_out)
        o_t = O2[1].reshape(B, N_t, R_out)

        # TODO(synk): original mlp is Seq(HypLinear(R_out,10), HypReLU, HypLinear(10,2));
        # HypLinear/HypReLU are external and a 2-channel output would not broadcast
        # with S_hat under .squeeze(-1); implemented as Linear(R_out,10)->ReLU->Linear(10,1).
        S_hat = consensus_update(S_hat, o_s, o_t, G_k,
                                 params["mlp_w1"], params["mlp_b1"],
                                 params["mlp_w2"], params["mlp_b2"], k=k)

    S_L = softmax_last(S_hat).reshape(B * N_s, k)
    S_idx_flat = S_idx.reshape(B * N_s, k)

    # TODO(synk): torch.sparse_coo_tensor has no JAX equivalent; return (COO indices,
    # values).  Columns are per-graph-local target indices, matching the reference
    # (which also uses local S_idx; offset by b*N_t if a global bipartite COO is wanted).
    row = jnp.repeat(jnp.arange(B * N_s, dtype=jnp.int32), k)
    coo_idx = jnp.stack([row, S_idx_flat.reshape(-1).astype(jnp.int32)], axis=0)
    return S_idx_flat, S_0, S_L, coo_idx


# ----------------------------------------------------------------------------
# Deterministic parameter init + demo
# ----------------------------------------------------------------------------
def init_params(key, C_in, C_out, R_in, R_out, hidden=10):
    ks = jax.random.split(key, 4)

    def glorot(kk, shp):
        scale = jnp.sqrt(2.0 / (shp[0] + shp[1]))
        return scale * jax.random.normal(kk, shp, dtype=jnp.float32)

    return {
        "c": 1.0,   # python float: baked into the kernels as a static constant
        "psi1_w": glorot(ks[0], (C_in, C_out)),
        "psi1_b": jnp.zeros((C_out,), jnp.float32),
        "psi2_w": glorot(ks[1], (R_in, R_out)),
        "psi2_b": jnp.zeros((R_out,), jnp.float32),
        "mlp_w1": glorot(ks[2], (R_out, hidden)),
        "mlp_b1": jnp.zeros((hidden,), jnp.float32),
        "mlp_w2": glorot(ks[3], (hidden, 1)),
        "mlp_b2": jnp.zeros((1,), jnp.float32),
    }


def ring_edges(B, N):
    idx = jnp.arange(B * N, dtype=jnp.int32)
    nxt = ((idx % N + 1) % N + (idx // N) * N).astype(jnp.int32)
    src = jnp.concatenate([idx, nxt])
    dst = jnp.concatenate([nxt, idx])
    return jnp.stack([src, dst], axis=0)


if __name__ == "__main__":
    B, N = 2, 16          # 2 graphs, 16 nodes each
    C_in = 8              # input node features
    C_out = 32            # psi_1 output (hyperboloid ambient dim)
    R_in, R_out = 16, 16  # psi_2 in/out channels
    k = 4                 # sparsity
    num_steps = 2

    key = jax.random.PRNGKey(0)
    kx1, kx2, kfwd, kpar = jax.random.split(key, 4)

    x_s = jax.random.normal(kx1, (B * N, C_in), dtype=jnp.float32)
    x_t = jax.random.normal(kx2, (B * N, C_in), dtype=jnp.float32)
    edge_index_s = ring_edges(B, N)
    edge_index_t = ring_edges(B, N)
    batch = jnp.repeat(jnp.arange(B, dtype=jnp.int32), N)

    params = init_params(jax.random.PRNGKey(42), C_in, C_out, R_in, R_out)

    fwd = functools.partial(hdgmc_ver1_forward, B=B, N=N, k=k,
                            num_steps=num_steps, key=kfwd)
    S_idx, S_0, S_L, coo_idx = fwd(params, x_s, edge_index_s, batch,
                                   x_t, edge_index_t, batch)
    jax.block_until_ready((S_idx, S_0, S_L, coo_idx))

    assert S_idx.shape == (B * N, k)
    assert S_0.shape == (B * N, k) and S_L.shape == (B * N, k)
    assert coo_idx.shape == (2, B * N * k)
    assert bool(jnp.all(jnp.isfinite(S_0))) and bool(jnp.all(jnp.isfinite(S_L)))
    print("KERNEL_OK")
</pallas_src>

<mosaic_0001>
module attributes {stable_mosaic.version = 11 : i64} {
  func.func @_gnn_kernel(%arg0: i32, %arg1: i32, %arg2: i32, %arg3: memref<1x32x32xbf16, #tpu.memory_space<vmem>>, %arg4: memref<1x32x8xbf16, #tpu.memory_space<vmem>>, %arg5: memref<8x32xf32, #tpu.memory_space<vmem>>, %arg6: memref<1x32xf32, #tpu.memory_space<vmem>>, %arg7: memref<1x32x32xf32, #tpu.memory_space<vmem>>, %arg8: memref<32x8xf32, #tpu.memory_space<vmem>>) attributes {dimension_semantics = [#tpu.dimension_semantics<parallel>, #tpu.dimension_semantics<parallel>, #tpu.dimension_semantics<arbitrary>], iteration_bounds = array<i64: 2, 1, 1>, scalar_prefetch = 0 : i64, scratch_operands = 1 : i64, tpu.core_type = #tpu.core_type<tc>, window_params = [{transform_indices = @transform_0, window_bounds = array<i64: 1, 32, 32>}, {transform_indices = @transform_1, window_bounds = array<i64: 1, 32, 8>}, {pipeline_mode = #tpu.pipeline_mode<synchronous>, transform_indices = @transform_2, window_bounds = array<i64: 8, 32>}, {pipeline_mode = #tpu.pipeline_mode<synchronous>, transform_indices = @transform_3, window_bounds = array<i64: 1, 32>}, {transform_indices = @transform_4, window_bounds = array<i64: 1, 32, 32>}]} {
    %c0_i32 = arith.constant 0 : i32
    %0 = arith.cmpi eq, %arg2, %c0_i32 : i32
    %1 = arith.extui %0 : i1 to i32
    %c0_i32_0 = arith.constant 0 : i32
    %2 = arith.cmpi ne, %1, %c0_i32_0 : i32
    scf.if %2 {
      %cst_12 = arith.constant 0.000000e+00 : f32
      %14 = vector.broadcast %cst_12 : f32 to vector<32x8xf32>
      %c0_13 = arith.constant 0 : index
      %c0_14 = arith.constant 0 : index
      %15 = vector.load %arg8[%c0_13, %c0_14] : memref<32x8xf32, #tpu.memory_space<vmem>>, vector<32x8xf32>
      tpu.vector_store %arg8[%c0_13, %c0_14], %14 {strides = array<i32>} : memref<32x8xf32, #tpu.memory_space<vmem>>, vector<32x8xf32>,
    } else {
    }
    %c0 = arith.constant 0 : index
    %c0_1 = arith.constant 0 : index
    %3 = vector.load %arg8[%c0, %c0_1] : memref<32x8xf32, #tpu.memory_space<vmem>>, vector<32x8xf32>
    %c0_2 = arith.constant 0 : index
    %c0_3 = arith.constant 0 : index
    %c0_4 = arith.constant 0 : index
    %4 = vector.load %arg3[%c0_2, %c0_3, %c0_4] : memref<1x32x32xbf16, #tpu.memory_space<vmem>>, vector<1x32x32xbf16>
    %5 = vector.shape_cast %4 : vector<1x32x32xbf16> to vector<32x32xbf16>
    %c0_5 = arith.constant 0 : index
    %c0_6 = arith.constant 0 : index
    %c0_7 = arith.constant 0 : index
    %6 = vector.load %arg4[%c0_5, %c0_6, %c0_7] : memref<1x32x8xbf16, #tpu.memory_space<vmem>>, vector<1x32x8xbf16>
    %7 = vector.shape_cast %6 : vector<1x32x8xbf16> to vector<32x8xbf16>
    %cst = arith.constant dense<0.000000e+00> : vector<32x8xf32>
    %8 = tpu.matmul %5, %7, %cst {dimension_numbers = #tpu.dot_dimension_numbers<[1], [0], [0], [1], [0, 0, 1, 1], [], []>} : vector<32x32xbf16>, vector<32x8xbf16>, vector<32x8xf32> -> vector<32x8xf32>
    %9 = arith.addf %3, %8 : vector<32x8xf32>
    %c0_8 = arith.constant 0 : index
    %c0_9 = arith.constant 0 : index
    %10 = vector.load %arg8[%c0_8, %c0_9] : memref<32x8xf32, #tpu.memory_space<vmem>>, vector<32x8xf32>
    tpu.vector_store %arg8[%c0_8, %c0_9], %9 {strides = array<i32>} : memref<32x8xf32, #tpu.memory_space<vmem>>, vector<32x8xf32>,
    %c0_i32_10 = arith.constant 0 : i32
    %11 = arith.cmpi eq, %arg2, %c0_i32_10 : i32
    %12 = arith.extui %11 : i1 to i32
    %c0_i32_11 = arith.constant 0 : i32
    %13 = arith.cmpi ne, %12, %c0_i32_11 : i32
    scf.if %13 {
      %c0_12 = arith.constant 0 : index
      %c0_13 = arith.constant 0 : index
      %14 = vector.load %arg8[%c0_12, %c0_13] : memref<32x8xf32, #tpu.memory_space<vmem>>, vector<32x8xf32>
      %c0_14 = arith.constant 0 : index
      %c0_15 = arith.constant 0 : index
      %15 = vector.load %arg5[%c0_14, %c0_15] : memref<8x32xf32, #tpu.memory_space<vmem>>, vector<8x32xf32>
      %cst_16 = arith.constant dense<0.000000e+00> : vector<32x32xf32>
      %16 = tpu.matmul %14, %15, %cst_16 {dimension_numbers = #tpu.dot_dimension_numbers<[1], [0], [0], [1], [0, 0, 1, 1], [], []>} : vector<32x8xf32>, vector<8x32xf32>, vector<32x32xf32> -> vector<32x32xf32>
      %c0_17 = arith.constant 0 : index
      %c0_18 = arith.constant 0 : index
      %17 = vector.load %arg6[%c0_17, %c0_18] : memref<1x32xf32, #tpu.memory_space<vmem>>, vector<1x32xf32>
      %18 = vector.broadcast %17 : vector<1x32xf32> to vector<32x32xf32>
      %19 = arith.addf %16, %18 : vector<32x32xf32>
      %cst_19 = arith.constant 0.000000e+00 : f32
      %20 = vector.broadcast %cst_19 : f32 to vector<32x32xf32>
      %21 = arith.maximumf %19, %20 : vector<32x32xf32>
      %22 = tpu.iota {dimensions = array<i32: 1>} : vector<32x32xi32>
      %c0_i32_20 = arith.constant 0 : i32
      %23 = vector.broadcast %c0_i32_20 : i32 to vector<32x32xi32>
      %24 = arith.cmpi eq, %22, %23 : vector<32x32xi32>
      %25 = tpu.iota {dimensions = array<i32: 1>} : vector<32x32xi32>
      %c0_i32_21 = arith.constant 0 : i32
      %26 = vector.broadcast %c0_i32_21 : i32 to vector<32x32xi32>
      %27 = arith.cmpi eq, %25, %26 : vector<32x32xi32>
      %cst_22 = arith.constant 0.000000e+00 : f32
      %28 = vector.broadcast %cst_22 : f32 to vector<32x32xf32>
      %29 = arith.select %27, %28, %21 : vector<32x32xi1>, vector<32x32xf32>
      %30 = arith.mulf %29, %29 : vector<32x32xf32>
      %cst_23 = arith.constant dense<0.000000e+00> : vector<32xf32>
      %31 = vector.multi_reduction <add>, %30, %cst_23 [1] : vector<32x32xf32> to vector<32xf32>
      %32 = vector.shape_cast %31 : vector<32xf32> to vector<32x1xf32>
      %33 = math.sqrt %32 : vector<32x1xf32>
      %cst_24 = arith.constant 1.000000e-15 : f32
      %34 = vector.broadcast %cst_24 : f32 to vector<32x1xf32>
      %35 = arith.maximumf %33, %34 : vector<32x1xf32>
      %cst_25 = arith.constant 1.000000e+00 : f32
      %36 = vector.broadcast %cst_25 : f32 to vector<32x1xf32>
      %37 = arith.divf %35, %36 : vector<32x1xf32>
      %38 = math.exp %37 : vector<32x1xf32>
      %cst_26 = arith.constant 1.000000e+00 : f32
      %39 = vector.broadcast %cst_26 : f32 to vector<32x1xf32>
      %40 = arith.divf %39, %38 : vector<32x1xf32>
      %41 = arith.subf %38, %40 : vector<32x1xf32>
      %cst_27 = arith.constant 5.000000e-01 : f32
      %42 = vector.broadcast %cst_27 : f32 to vector<32x1xf32>
      %43 = arith.mulf %42, %41 : vector<32x1xf32>
      %cst_28 = arith.constant 1.000000e+00 : f32
      %44 = vector.broadcast %cst_28 : f32 to vector<32x1xf32>
      %45 = arith.mulf %44, %43 : vector<32x1xf32>
      %46 = vector.broadcast %45 : vector<32x1xf32> to vector<32x32xf32>
      %47 = arith.mulf %46, %29 : vector<32x32xf32>
      %48 = vector.broadcast %35 : vector<32x1xf32> to vector<32x32xf32>
      %49 = arith.divf %47, %48 : vector<32x32xf32>
      %50 = arith.mulf %49, %49 : vector<32x32xf32>
      %cst_29 = arith.constant dense<0.000000e+00> : vector<32xf32>
      %51 = vector.multi_reduction <add>, %50, %cst_29 [1] : vector<32x32xf32> to vector<32xf32>
      %52 = vector.shape_cast %51 : vector<32xf32> to vector<32x1xf32>
      %cst_30 = arith.constant 1.000000e+00 : f32
      %53 = vector.broadcast %cst_30 : f32 to vector<32x1xf32>
      %54 = arith.addf %53, %52 : vector<32x1xf32>
      %cst_31 = arith.constant 1.000000e-07 : f32
      %55 = vector.broadcast %cst_31 : f32 to vector<32x1xf32>
      %56 = arith.maximumf %54, %55 : vector<32x1xf32>
      %57 = math.sqrt %56 : vector<32x1xf32>
      %58 = vector.shape_cast %57 : vector<32x1xf32> to vector<32x1xf32>
      %59 = vector.broadcast %58 : vector<32x1xf32> to vector<32x32xf32>
      %60 = arith.select %27, %59, %49 : vector<32x32xi1>, vector<32x32xf32>
      %cst_32 = arith.constant 0.000000e+00 : f32
      %61 = vector.broadcast %cst_32 : f32 to vector<32x32xf32>
      %62 = arith.select %24, %61, %60 : vector<32x32xi1>, vector<32x32xf32>
      %63 = arith.mulf %62, %62 : vector<32x32xf32>
      %cst_33 = arith.constant dense<0.000000e+00> : vector<32xf32>
      %64 = vector.multi_reduction <add>, %63, %cst_33 [1] : vector<32x32xf32> to vector<32xf32>
      %65 = vector.shape_cast %64 : vector<32xf32> to vector<32x1xf32>
      %66 = math.sqrt %65 : vector<32x1xf32>
      %cst_34 = arith.constant 1.000000e-15 : f32
      %67 = vector.broadcast %cst_34 : f32 to vector<32x1xf32>
      %68 = arith.maximumf %66, %67 : vector<32x1xf32>
      %69 = vector.extract_strided_slice %60 {offsets = [0, 0], sizes = [32, 1], strides = [1, 1]} : vector<32x32xf32> to vector<32x1xf32>
      %cst_35 = arith.constant 1.000000e+00 : f32
      %70 = vector.broadcast %cst_35 : f32 to vector<32x1xf32>
      %71 = arith.divf %69, %70 : vector<32x1xf32>
      %cst_36 = arith.constant 1.00000012 : f32
      %72 = vector.broadcast %cst_36 : f32 to vector<32x1xf32>
      %73 = arith.maximumf %71, %72 : vector<32x1xf32>
      %74 = arith.mulf %73, %73 : vector<32x1xf32>
      %cst_37 = arith.constant 1.000000e+00 : f32
      %75 = vector.broadcast %cst_37 : f32 to vector<32x1xf32>
      %76 = arith.subf %74, %75 : vector<32x1xf32>
      %cst_38 = arith.constant 1.000000e-15 : f32
      %77 = vector.broadcast %cst_38 : f32 to vector<32x1xf32>
      %78 = arith.maximumf %76, %77 : vector<32x1xf32>
      %79 = math.sqrt %78 : vector<32x1xf32>
      %80 = arith.addf %73, %79 : vector<32x1xf32>
      %81 = math.log %80 : vector<32x1xf32>
      %cst_39 = arith.constant 1.000000e+00 : f32
      %82 = vector.broadcast %cst_39 : f32 to vector<32x1xf32>
      %83 = arith.mulf %82, %81 : vector<32x1xf32>
      %84 = vector.broadcast %83 : vector<32x1xf32> to vector<32x32xf32>
      %85 = arith.mulf %84, %62 : vector<32x32xf32>
      %86 = vector.broadcast %68 : vector<32x1xf32> to vector<32x32xf32>
      %87 = arith.divf %85, %86 : vector<32x32xf32>
      %cst_40 = arith.constant 0.000000e+00 : f32
      %88 = vector.broadcast %cst_40 : f32 to vector<32x32xf32>
      %89 = arith.select %24, %88, %87 : vector<32x32xi1>, vector<32x32xf32>
      %c0_41 = arith.constant 0 : index
      %c0_42 = arith.constant 0 : index
      %c0_43 = arith.constant 0 : index
      %90 = vector.load %arg7[%c0_41, %c0_42, %c0_43] : memref<1x32x32xf32, #tpu.memory_space<vmem>>, vector<1x32x32xf32>
      %91 = vector.shape_cast %90 : vector<1x32x32xf32> to vector<32x32xf32>
      %92 = vector.shape_cast %89 : vector<32x32xf32> to vector<1x32x32xf32>
      tpu.vector_store %arg7[%c0_41, %c0_42, %c0_43], %92 {strides = array<i32>} : memref<1x32x32xf32, #tpu.memory_space<vmem>>, vector<1x32x32xf32>,
    } else {
    }
    return
  }
  func.func @transform_0(%arg0: i32, %arg1: i32, %arg2: i32) -> (i32, i32, i32) {
    %c0_i32 = arith.constant 0 : i32
    return %arg0, %arg1, %arg2 : i32, i32, i32
  }
  func.func @transform_1(%arg0: i32, %arg1: i32, %arg2: i32) -> (i32, i32, i32) {
    %c0_i32 = arith.constant 0 : i32
    %c0_i32_0 = arith.constant 0 : i32
    return %arg0, %arg2, %c0_i32 : i32, i32, i32
  }
  func.func @transform_2(%arg0: i32, %arg1: i32, %arg2: i32) -> (i32, i32) {
    %c0_i32 = arith.constant 0 : i32
    %c0_i32_0 = arith.constant 0 : i32
    %c0_i32_1 = arith.constant 0 : i32
    return %c0_i32, %c0_i32_0 : i32, i32
  }
  func.func @transform_3(%arg0: i32, %arg1: i32, %arg2: i32) -> (i32, i32) {
    %c0_i32 = arith.constant 0 : i32
    %c0_i32_0 = arith.constant 0 : i32
    %c0_i32_1 = arith.constant 0 : i32
    return %c0_i32, %c0_i32_0 : i32, i32
  }
  func.func @transform_4(%arg0: i32, %arg1: i32, %arg2: i32) -> (i32, i32, i32) {
    %c0_i32 = arith.constant 0 : i32
    %c0_i32_0 = arith.constant 0 : i32
    return %arg0, %arg1, %c0_i32 : i32, i32, i32
  }
}

</mosaic_0001>

<bundles_post_ra>
// kernel: tpu_custom_call.1
= control target key start
LH: loop header
LB: loop body
LE: loop exit
PB: predicated region body
PF: predicated region fallthrough
CT: control target
= control target key end

     0   :  { %9 = vsyncpa [#allocation4], 0  ;;  %s1786_s0 = inlined_call_operand.vmem [shape: bf16[2,32,32], index: 0, kind: input, shape index: {}]   ;;  %s1787_s1 = inlined_call_operand.vmem [shape: bf16[2,32,8], index: 1, kind: input, shape index: {}]   ;;  %s1788_s2 = inlined_call_operand.vmem [shape: f32[8,32], index: 2, kind: input, shape index: {}]   ;;  %s1789_s3 = inlined_call_operand.vmem [shape: f32[1,32], index: 3, kind: input, shape index: {}]   ;;  %s1790_s4 = inlined_call_operand.hbm [shape: f32[2,32,32], index: 4, kind: output, shape index: {}]  }
   0x1   :  { %11 = vsyncpa [#allocation4 + $0x1], 0  ;;  %s1364_s15 = smov 0   ;;  %s1366_s16 = smov 0  }
   0x2   :  { %s1368_s17 = smov 0   ;;  %s1370_s18 = smov 0  }
   0x3   :  { %s1372_s19 = smov 0   ;;  %s1374_s20 = smov 0  }
   0x4 LB: > { %s1069_s21 = sadd.s32 4294967295, %s1333_s20   ;;  %s1070_s22 = sadd.s32 4294967294, %s1333_s20   ;;  %s1333_s20 = sphi %s1374_s20, %s17_s20   ;;  %s1329_s19 = sphi %s1372_s19, %s1805_s19   ;;  %s1325_s18 = sphi %s1370_s18, %s1804_s18   ;;  %s1321_s17 = sphi %s1368_s17, %s1803_s17   ;;  %s1317_s16 = sphi %s1366_s16, %s1802_s16   ;;  %s1313_s15 = sphi %s1364_s15, %s1801_s15  }
   0x5   : > { %s36_s23 = sadd.s32 1, %s1329_s19  ;;  %s145_s24 = sadd.s32 1, %s1321_s17 }
   0x6   : > { %p38_p0 = scmp.ge.s32.totalorder %s36_s23, 2  ;;  %p155_p1 = scmp.ne.s32.totalorder %s1321_s17, %s1317_s16 }
   0x7   : > { %p156_p2 = scmp.eq.s32.totalorder %s1069_s21, 1  ;;  %p161_p3 = scmp.ne.s32.totalorder %s1317_s16, %s1313_s15 }
   0x8   : > { %s1807_s23 = smov (%p38_p0, %s36_s23), 0  ;;  %p162_p5 = scmp.eq.s32.totalorder %s1070_s22, 1 }
   0x9   : > { %p1404_p4 = por %p156_p2, %p155_p1  ;;  %s140_s26 = ssub.s32 %s1329_s19, %s1807_s23 }
   0xa   : > { %p1073_p6 = scmp.ge.s32.totalorder %s1333_s20, 1  ;;  %p143_p7 = scmp.eq.s32.totalorder %s140_s26, 0 }
   0xb   : > { %p1411_p8 = por %p162_p5, %p161_p3  ;;  %p215_p9 = scmp.lt.s32.totalorder %s1333_s20, 3 }
   0xc   : > { %s1417_s28 = scalar_select %p143_p7, %s1321_s17, %s145_s24  }
   0xd   : > { %p216_p10 = pnand %p1073_p6, %p215_p9 }
   0xe   : > { %p258_p11 = scmp.lt.s32.totalorder (!%p216_p10), %s1325_s18, 1  ;;  %s254_s21 = sand.u32 (!%p216_p10), 1, %s1317_s16  }
   0xf   : > { %219 = sbr.rel (%p216_p10) target bundleno = 798 (0x31e), region = 36  ;;  %s1074_s22 = sshll.u32 (!%p216_p10), %s254_s21, 5 }
  0x10   : > { %s1717_s24 = scalar_lea.vmem (!%p216_p10), [#allocation3], %s1074_s22  ;;  %s1116_s26 = sshll.u32 (!%p216_p10), %s1325_s18, 5 }
  0x11   : > { %s962_s5 = scalar_lea.hbm (!%p216_p10), %s1790_s4, %s1116_s26  ;;  %s1275_s12 = scalar_lea.hbm (!%p216_p10), %s1790_s4, 64 }
  0x12   : > { %s965_s6 = sshll.u32 (!%p216_p10), %s962_s5, 4  ;;  %s966_s6 = int_to_ptr.hbm [resolvable:$true] %s965_s6 }
  0x13   : > { %s1269_s8 = sshra.s32 (!%p216_p10), %s966_s6, 4  ;;  %s1270_s8 = int_to_ptr.hbm [resolvable:$true] %s1269_s8 }
  0x14   : > { %vm286_vm0 = vcmask 64512   ;;  %v1335_v0 = vmov 0.0   ;;  %s259_s29 = scalar_select %p258_p11, %s1325_s18, 1  ;;  %vm325_vm1 = vcmask 261120   ;;  %v367_v5 = vld [vmem:[%s1788_s2] sm:$0xff]  ;;  %v417_v22 = vlaneseq }
  0x15   : > { %287 = vst.msk [vmem:[#allocation2] sm:$0xff] %vm286_vm0, %v1335_v0  ;;  %399 = vmatpush.msra.mxu1 %v367_v5  ;;  %1119 = vmatpush.msra.mxu3 %v367_v5  ;;  %v1182_v23 = vld [vmem:[%s1789_s3] ss:$0 sm:$0xff]  ;;  %s963_s18 = sshll.u32 %s1717_s24, 4  ;;  %s1271_s9 = scalar_lea.hbm %s1270_s8, 32  ;;  %s964_s18 = int_to_ptr.vmem [resolvable:$true] %s963_s18 }
  0x16   : > { %288 = vst.msk [vmem:[#allocation2 + $0x8] sm:$0xff] %vm286_vm0, %v1335_v0  ;;  %s1110_s30 = sshll.u32 %s259_s29, 4  ;;  %v1447_v24 = vand.u32 127, %v417_v22  ;;  %p1272_p12 = scmp.ne.s32.totalorder %s1270_s8, %s1271_s9 }
  0x17   : > { %289 = vst.msk [vmem:[#allocation2 + $0x10] sm:$0xff] %vm286_vm0, %v1335_v0  ;;  %s278_s7 = scalar_lea.vmem %s1787_s1, %s1110_s30  ;;  %s268_s10 = scalar_lea.vmem %s1786_s0, %s1110_s30 }
  0x18   : > { %290 = vst.msk [vmem:[#allocation2 + $0x18] sm:$0xff] %vm286_vm0, %v1335_v0  ;;  %v1115_v1 = vld [vmem:[%s278_s7 + $0x8] sm:$0xff]  ;;  %v1114_v2 = vld [vmem:[%s278_s7] sm:$0xff]  ;;  %vm419_vm2 = vcmp.eq.s32.totalorder %v1447_v24, 0  ;;  %s949_s7 = scalar_lea.sflag [#allocation4], %s254_s21  ;;  %p1273_p13 = pnand %p1272_p12, %p1404_p4 }
  0x19   : > { %338 = vmatpush.bf16.msra.mxu0 %v1115_v1  ;;  %1117 = vmatpush.bf16.msra.mxu2 %v1115_v1  ;;  %v1112_v3 = vld [vmem:[%s268_s10] sm:$0xff]  ;;  %v1113_v4 = vld [vmem:[%s268_s10 + $0x8] sm:$0xff]  ;;  %p1276_p1 = scmp.lt.s32.totalorder %s1270_s8, %s1790_s4  ;;  %p1277_p2 = scmp.lt.s32.totalorder %s1275_s12, %s1271_s9 }
  0x1a   : > { %p1274_p0 = pneg %p1273_p13 }
  0x1b   : > { %p1278_p3 = por %p1277_p2, %p1276_p1 }
  0x1c   : > { %v291_v6 = vld [vmem:[#allocation2] sm:$0xff] }
  0x1d   : > { %339 = vmatpush.bf16.msra.mxu0 %v1114_v2  ;;  %1118 = vmatpush.bf16.msra.mxu2 %v1114_v2  ;;  %v292_v10 = vld [vmem:[#allocation2 + $0x8] sm:$0xff]  ;;  %p1279_p5 = pnand %p1278_p3, %p1274_p0 }
  0x1e   : > { %v293_v9 = vld [vmem:[#allocation2 + $0x10] sm:$0xff] }
  0x1f   : > { %v294_v16 = vld [vmem:[#allocation2 + $0x18] sm:$0xff] }
  0x20   : > { %1095 = vmatmul.msk.bf16.vlgmr.msra.gmra.mxu0 %vm325_vm1, %v1112_v3  ;;  %1096 = vmatmul.msk.bf16.vlgmr.msra.gmra.mxu2 %vm325_vm1, %v1113_v4 }
  0x9d   : > { %v341_v7 = vpop.f32.mrf.mxu0 }
  0x9e   : > { %v351_v8 = vadd.f32 %v341_v7, %v291_v6 }
  0xa0   : > { %356 = vst.msk [vmem:[#allocation2] sm:$0xff] %vm286_vm0, %v351_v8 }
  0xa3   : > { %v346_v11 = vpop.f32.mrf.mxu2 }
  0xa4   : > { %v353_v12 = vadd.f32 %v346_v11, %v293_v9 }
  0xa5   : > { %v343_v13 = vpop.f32.mrf.mxu0 }
  0xa6   : > { %v352_v14 = vadd.f32 %v343_v13, %v292_v10  ;;  %358 = vst.msk [vmem:[#allocation2 + $0x10] sm:$0xff] %vm286_vm0, %v353_v12 }
  0xa7   : > { %v363_v15 = vld [vmem:[#allocation2] sm:$0xff] }
  0xa8   : > { %357 = vst.msk [vmem:[#allocation2 + $0x8] sm:$0xff] %vm286_vm0, %v352_v14  ;;  %1097 = vmatmul.msk.f32.vlgmr.msra.gmra.mxu1 %vm286_vm0, %v363_v15 }
  0xab   : > { %v348_v17 = vpop.f32.mrf.mxu2 }
  0xac   : > { %v354_v18 = vadd.f32 %v348_v17, %v294_v16 }
  0xad   : > { %v365_v20 = vld [vmem:[#allocation2 + $0x10] sm:$0xff] }
  0xae   : > { %359 = vst.msk [vmem:[#allocation2 + $0x18] sm:$0xff] %vm286_vm0, %v354_v18 }
  0xaf   : > { %v364_v19 = vld [vmem:[#allocation2 + $0x8] sm:$0xff] }
  0xb0   : > { %1098 = vmatmul.msk.f32.vlgmr.msra.gmra.mxu3 %vm286_vm0, %v364_v19 }
  0xb5   : > { %v366_v21 = vld [vmem:[#allocation2 + $0x18] sm:$0xff] }
  0xb8   : > { %1099 = vmatmul.msk.f32.gmra.mxu3 %vm286_vm0, %v365_v20 }
  0xc0   : > { %1100 = vmatmul.msk.f32.gmra.mxu3 %vm286_vm0, %v366_v21 }
 0x125   : > { %v401_v25 = vpop.f32.mrf.mxu1 }
 0x126   : > { %v402_v26 = vadd.f32 %v1182_v23, %v401_v25 }
 0x128   : > { %v413_v27 = vmax.f32 %v402_v26, 0.0 }
 0x12a   : > { %v1452_v28 = vsel %vm419_vm2, 0.0, %v413_v27 }
 0x12b   : > { %v424_v29 = vmul.f32 %v1452_v28, %v1452_v28 }
 0x12d   : > { %v428_v30 = vsel %vm325_vm1, %v424_v29, 0.0 }
 0x12e   : > { %429 = vadd.xlane.f32.xlu0 %v428_v30 }
 0x133   : > { %v404_v31 = vpop.f32.mrf.mxu3 }
 0x134   : > { %v405_v32 = vadd.f32 %v1182_v23, %v404_v31 }
 0x136   : > { %v414_v33 = vmax.f32 %v405_v32, 0.0 }
 0x138   : > { %v1459_v34 = vsel %vm419_vm2, 0.0, %v414_v33 }
 0x139   : > { %v425_v35 = vmul.f32 %v1459_v34, %v1459_v34 }
 0x13b   : > { %v407_v36 = vpop.f32.mrf.mxu3  ;;  %v431_v37 = vsel %vm325_vm1, %v425_v35, 0.0 }
 0x13c   : > { %v408_v38 = vadd.f32 %v1182_v23, %v407_v36  ;;  %432 = vadd.xlane.f32.xlu0 %v431_v37 }
 0x13e   : > { %v415_v39 = vmax.f32 %v408_v38, 0.0 }
 0x140   : > { %v1466_v40 = vsel %vm419_vm2, 0.0, %v415_v39 }
 0x141   : > { %v426_v41 = vmul.f32 %v1466_v40, %v1466_v40 }
 0x143   : > { %v410_v42 = vpop.f32.mrf.mxu3  ;;  %v434_v43 = vsel %vm325_vm1, %v426_v41, 0.0 }
 0x144   : > { %v411_v44 = vadd.f32 %v1182_v23, %v410_v42  ;;  %435 = vadd.xlane.f32.xlu1 %v434_v43 }
 0x146   : > { %v416_v45 = vmax.f32 %v411_v44, 0.0 }
 0x148   : > { %v1473_v46 = vsel %vm419_vm2, 0.0, %v416_v45 }
 0x149   : > { %v427_v47 = vmul.f32 %v1473_v46, %v1473_v46 }
 0x14b   : > { %v437_v48 = vsel %vm325_vm1, %v427_v47, 0.0 }
 0x14c   : > { %438 = vadd.xlane.f32.xlu1 %v437_v48 }
 0x1a1   : > { %v430_v49 = vpop.xlane.xlu0 %429 }
 0x1a2   : > { %1183 = vrsqrt.f32 %v430_v49  ;;  %vm447_vm3 = vcmp.eq.f32.partialorder %v430_v49, inf  ;;  %v450_v58 = vand.u32 2147483648, %v430_v49  ;;  %vm449_vm4 = vcmp.eq.f32.partialorder %v430_v49, 0.0 }
 0x1a8   : > { %v1184_v50 = vpop.eup %1183 }
 0x1a9   : > { %v441_v51 = vmul.f32 %v1184_v50, %v430_v49 }
 0x1ab   : > { %v442_v52 = vmul.f32 %v1184_v50, %v441_v51 }
 0x1ad   : > { %v443_v53 = vmul.f32 0.5, %v442_v52 }
 0x1af   : > { %v444_v54 = vsub.f32 1.5, %v443_v53  ;;  %v433_v55 = vpop.xlane.xlu0 %432 }
 0x1b0   : > { %1185 = vrsqrt.f32 %v433_v55  ;;  %vm459_vm5 = vcmp.eq.f32.partialorder %v433_v55, inf  ;;  %v462_v13 = vand.u32 2147483648, %v433_v55  ;;  %vm461_vm6 = vcmp.eq.f32.partialorder %v433_v55, 0.0 }
 0x1b1   : > { %v445_v56 = vmul.f32 %v1184_v50, %v444_v54 }
 0x1b3   : > { %v446_v57 = vmul.f32 %v445_v56, %v430_v49 }
 0x1b5   : > { %v448_v59 = vsel %vm447_vm3, %v430_v49, %v446_v57 }
 0x1b6   : > { %v1186_v60 = vpop.eup %1185  ;;  %v451_v61 = vsel %vm449_vm4, %v450_v58, %v448_v59 }
 0x1b7   : > { %v1478_v62 = vmax.f32 %v451_v61, 1e-15  ;;  %v453_v63 = vmul.f32 %v1186_v60, %v433_v55  ;;  %v436_v0 = vpop.xlane.xlu1 %435 }
 0x1b8   : > { %1187 = vrsqrt.f32 %v436_v0  ;;  %vm471_vm7 = vcmp.eq.f32.partialorder %v436_v0, inf  ;;  %v474_v31 = vand.u32 2147483648, %v436_v0  ;;  %vm473_vm8 = vcmp.eq.f32.partialorder %v436_v0, 0.0 }
 0x1b9   : > { %v492_v1 = vmul.f32 1.442695, %v1478_v62  ;;  %v454_v2 = vmul.f32 %v1186_v60, %v453_v63  ;;  %1189 = vrcp.f32 %v1478_v62  ;;  %v581_v45 = vand.u32 2147483647, %v1478_v62 }
 0x1ba   : > { %v583_v47 = vand.u32 2147483648, %v1478_v62  ;;  %vm577_vm0 = vweird.f32 %v1478_v62 }
 0x1bb   : > { %1191 = vpow2.f32 %v492_v1  ;;  %v455_v3 = vmul.f32 0.5, %v454_v2  ;;  %vm582_vm4 = vcmp.eq.f32.partialorder %v581_v45, 8.507059e+37 }
 0x1bd   : > { %v456_v4 = vsub.f32 1.5, %v455_v3 }
 0x1be   : > { %v1188_v5 = vpop.eup %1187 }
 0x1bf   : > { %v457_v6 = vmul.f32 %v1186_v60, %v456_v4  ;;  %v465_v7 = vmul.f32 %v1188_v5, %v436_v0  ;;  %v1482_v8 = vpop.xlane.xlu1 %438  ;;  %v1484_v9 = vpop.eup %1189  ;;  %v584_v4 = vor.u32 1.1754944e-38, %v583_v47 }
 0x1c0   : > { %1193 = vrsqrt.f32 %v1482_v8  ;;  %v573_v17 = vmul.f32 %v1484_v9, %v1478_v62  ;;  %vm578_vm13 = vweird.f32 %v1484_v9  ;;  %vm483_vm14 = vcmp.eq.f32.partialorder %v1482_v8, inf }
 0x1c1   : > { %v1487_v10 = vpop.eup %1191  ;;  %v458_v11 = vmul.f32 %v457_v6, %v433_v55  ;;  %v466_v12 = vmul.f32 %v1188_v5, %v465_v7  ;;  %v486_v56 = vand.u32 2147483648, %v1482_v8  ;;  %vm485_vm15 = vcmp.eq.f32.partialorder %v1482_v8, 0.0  ;;  %vm579_vm3 = vmor %vm577_vm0, %vm578_vm13 }
 0x1c2   : > { %1195 = vrcp.f32 %v1487_v10  ;;  %v574_v26 = vsub.f32 1.0, %v573_v17  ;;  %v509_v37 = vand.u32 2147483647, %v1487_v10  ;;  %v511_v38 = vand.u32 2147483648, %v1487_v10 }
 0x1c3   : > { %v460_v14 = vsel %vm459_vm5, %v433_v55, %v458_v11  ;;  %v467_v15 = vmul.f32 0.5, %v466_v12  ;;  %vm505_vm10 = vweird.f32 %v1487_v10 }
 0x1c4   : > { %v463_v16 = vsel %vm461_vm6, %v462_v13, %v460_v14  ;;  %v575_v39 = vmul.f32 %v1484_v9, %v574_v26  ;;  %vm510_vm12 = vcmp.eq.f32.partialorder %v509_v37, 8.507059e+37  ;;  %v512_v52 = vor.u32 1.1754944e-38, %v511_v38 }
 0x1c5   : > { %v1492_v18 = vmax.f32 %v463_v16, 1e-15  ;;  %v468_v19 = vsub.f32 1.5, %v467_v15 }
 0x1c6   : > { %v1194_v20 = vpop.eup %1193  ;;  %v576_v55 = vadd.f32 %v1484_v9, %v575_v39 }
 0x1c7   : > { %v494_v21 = vmul.f32 1.442695, %v1492_v18  ;;  %v469_v22 = vmul.f32 %v1188_v5, %v468_v19  ;;  %v477_v23 = vmul.f32 %v1194_v20, %v1482_v8  ;;  %1197 = vrcp.f32 %v1492_v18 }
 0x1c8   : > { %v1196_v25 = vpop.eup %1195  ;;  %v580_v2 = vsel %vm579_vm3, %v1484_v9, %v576_v55 }
 0x1c9   : > { %1199 = vpow2.f32 %v494_v21  ;;  %v470_v27 = vmul.f32 %v469_v22, %v436_v0  ;;  %v478_v29 = vmul.f32 %v1194_v20, %v477_v23  ;;  %v501_v30 = vmul.f32 %v1196_v25, %v1487_v10 }
 0x1ca   : > { %vm506_vm9 = vweird.f32 %v1196_v25 }
 0x1cb   : > { %v472_v32 = vsel %vm471_vm7, %v436_v0, %v470_v27  ;;  %v479_v33 = vmul.f32 0.5, %v478_v29  ;;  %v502_v35 = vsub.f32 1.0, %v501_v30  ;;  %vm507_vm11 = vmor %vm505_vm10, %vm506_vm9  ;;  %vm592_vm10 = vweird.f32 %v1492_v18 }
 0x1cc   : > { %v475_v36 = vsel %vm473_vm8, %v474_v31, %v472_v32  ;;  %v596_v31 = vand.u32 2147483647, %v1492_v18  ;;  %v598_v32 = vand.u32 2147483648, %v1492_v18 }
 0x1cd   : > { %v1501_v41 = vmax.f32 %v475_v36, 1e-15  ;;  %v480_v42 = vsub.f32 1.5, %v479_v33  ;;  %v503_v43 = vmul.f32 %v1196_v25, %v502_v35  ;;  %v1503_v44 = vpop.eup %1197 }
 0x1ce   : > { %v588_v58 = vmul.f32 %v1503_v44, %v1492_v18  ;;  %vm593_vm8 = vweird.f32 %v1503_v44  ;;  %vm597_vm13 = vcmp.eq.f32.partialorder %v596_v31, 8.507059e+37  ;;  %v599_v47 = vor.u32 1.1754944e-38, %v598_v32 }
 0x1cf   : > { %v1508_v48 = vpop.eup %1199  ;;  %v496_v49 = vmul.f32 1.442695, %v1501_v41  ;;  %1201 = vrcp.f32 %v1501_v41  ;;  %v481_v50 = vmul.f32 %v1194_v20, %v480_v42  ;;  %v504_v51 = vadd.f32 %v1196_v25, %v503_v43 }
 0x1d0   : > { %1203 = vrcp.f32 %v1508_v48  ;;  %v589_v5 = vsub.f32 1.0, %v588_v58  ;;  %v526_v12 = vand.u32 2147483648, %v1508_v48  ;;  %v524_v16 = vand.u32 2147483647, %v1508_v48 }
 0x1d1   : > { %1205 = vpow2.f32 %v496_v49  ;;  %v482_v53 = vmul.f32 %v481_v50, %v1482_v8  ;;  %v508_v54 = vsel %vm507_vm11, %v1196_v25, %v504_v51  ;;  %vm520_vm6 = vweird.f32 %v1508_v48  ;;  %vm1561_vm11 = vmor %vm592_vm10, %vm593_vm8 }
 0x1d2   : > { %v513_v57 = vsel %vm510_vm12, %v512_v52, %v508_v54  ;;  %v590_v13 = vmul.f32 %v1503_v44, %v589_v5  ;;  %v527_v22 = vor.u32 1.1754944e-38, %v526_v12  ;;  %vm525_vm9 = vcmp.eq.f32.partialorder %v524_v16, 8.507059e+37 }
 0x1d3   : > { %v484_v59 = vsel %vm483_vm14, %v1482_v8, %v482_v53  ;;  %v560_v60 = vsub.f32 %v1487_v10, %v513_v57  ;;  %v585_v10 = vsel %vm582_vm4, %v584_v4, %v580_v2  ;;  %vm607_vm4 = vweird.f32 %v1501_v41 }
 0x1d4   : > { %v487_v61 = vsel %vm485_vm15, %v486_v56, %v484_v59  ;;  %v591_v23 = vadd.f32 %v1503_v44, %v590_v13  ;;  %v613_v58 = vand.u32 2147483648, %v1501_v41 }
 0x1d5   : > { %v1526_v63 = vpop.eup %1201  ;;  %v1528_v0 = vmax.f32 %v487_v61, 1e-15  ;;  %v564_v1 = vmul.f32 0.5, %v560_v60 }
 0x1d6   : > { %v1204_v3 = vpop.eup %1203  ;;  %v603_v14 = vmul.f32 %v1526_v63, %v1501_v41  ;;  %v595_v37 = vsel %vm1561_vm11, %v1503_v44, %v591_v23  ;;  %vm608_vm15 = vweird.f32 %v1526_v63 }
 0x1d7   : > { %v1531_v6 = vpop.eup %1205  ;;  %v498_v7 = vmul.f32 1.442695, %v1528_v0  ;;  %1207 = vrcp.f32 %v1528_v0  ;;  %v568_v62 = vmul.f32 %v564_v1, %v1452_v28  ;;  %v516_v8 = vmul.f32 %v1204_v3, %v1508_v48 }
 0x1d8   : > { %1209 = vrcp.f32 %v1531_v6  ;;  %vm521_vm5 = vweird.f32 %v1204_v3  ;;  %v604_v25 = vsub.f32 1.0, %v603_v14  ;;  %v541_v38 = vand.u32 2147483648, %v1531_v6 }
 0x1d9   : > { %1211 = vpow2.f32 %v498_v7  ;;  %v1538_v11 = vmul.f32 %v585_v10, %v568_v62  ;;  %v517_v9 = vsub.f32 1.0, %v516_v8  ;;  %vm522_vm7 = vmor %vm520_vm6, %vm521_vm5  ;;  %v539_v45 = vand.u32 2147483647, %v1531_v6 }
 0x1da   : > { %v605_v39 = vmul.f32 %v1526_v63, %v604_v25  ;;  %vm535_vm14 = vweird.f32 %v1531_v6  ;;  %v600_v50 = vsel %vm597_vm13, %v599_v47, %v595_v37  ;;  %v542_v51 = vor.u32 1.1754944e-38, %v541_v38  ;;  %vm1588_vm5 = vmor %vm607_vm4, %vm608_vm15 }
 0x1db   : > { %v632_v15 = vmul.f32 %v1538_v11, %v1538_v11  ;;  %v518_v28 = vmul.f32 %v1204_v3, %v517_v9  ;;  %vm540_vm3 = vcmp.eq.f32.partialorder %v539_v45, 8.507059e+37  ;;  %v1595_v1 = vsel %vm419_vm2, 0.0, %v1538_v11 }
 0x1dc   : > { %v606_v52 = vadd.f32 %v1526_v63, %v605_v39  ;;  %v614_v8 = vor.u32 1.1754944e-38, %v613_v58  ;;  %v712_v12 = vmul.f32 %v1595_v1, %v1595_v1 }
 0x1dd   : > { %v1547_v17 = vpop.eup %1207  ;;  %v636_v19 = vsel %vm325_vm1, %v632_v15, 0.0  ;;  %v519_v20 = vadd.f32 %v1204_v3, %v518_v28 }
 0x1de   : > { %v1210_v21 = vpop.eup %1209  ;;  %637 = vadd.xlane.f32.xlu2 %v636_v19  ;;  %v618_v18 = vmul.f32 %v1547_v17, %v1528_v0  ;;  %vm623_vm10 = vweird.f32 %v1547_v17  ;;  %v716_v23 = vsel %vm325_vm1, %v712_v12, 0.0 }
 0x1df   : > { %v1553_v26 = vpop.eup %1211  ;;  %v523_v27 = vsel %vm522_vm7, %v1204_v3, %v519_v20  ;;  %v531_v29 = vmul.f32 %v1210_v21, %v1531_v6  ;;  %vm536_vm12 = vweird.f32 %v1210_v21 }
 0x1e0   : > { %v528_v30 = vsel %vm525_vm9, %v527_v22, %v523_v27  ;;  %1213 = vrcp.f32 %v1553_v26  ;;  %vm537_vm0 = vmor %vm535_vm14, %vm536_vm12  ;;  %v619_v53 = vsub.f32 1.0, %v618_v18  ;;  %v554_v3 = vand.u32 2147483647, %v1553_v26 }
 0x1e1   : > { %v561_v33 = vsub.f32 %v1508_v48, %v528_v30  ;;  %v532_v36 = vsub.f32 1.0, %v531_v29  ;;  %v556_v4 = vand.u32 2147483648, %v1553_v26  ;;  %vm550_vm8 = vweird.f32 %v1553_v26 }
 0x1e2   : > { %v620_v5 = vmul.f32 %v1547_v17, %v619_v53  ;;  %vm555_vm11 = vcmp.eq.f32.partialorder %v554_v3, 8.507059e+37  ;;  %vm622_vm12 = vweird.f32 %v1528_v0 }
 0x1e3   : > { %v565_v42 = vmul.f32 0.5, %v561_v33  ;;  %v533_v43 = vmul.f32 %v1210_v21, %v532_v36  ;;  %v557_v13 = vor.u32 1.1754944e-38, %v556_v4  ;;  %vm624_vm13 = vmor %vm622_vm12, %vm623_vm10 }
 0x1e4   : > { %v621_v28 = vadd.f32 %v1547_v17, %v620_v5 }
 0x1e5   : > { %v569_v48 = vmul.f32 %v565_v42, %v1459_v34  ;;  %v534_v49 = vadd.f32 %v1210_v21, %v533_v43  ;;  %v611_v34 = vand.u32 2147483647, %v1501_v41  ;;  %v610_v41 = vsel %vm1588_vm5, %v1526_v63, %v606_v52 }
 0x1e6   : > { %v1214_v44 = vpop.eup %1213  ;;  %v625_v27 = vsel %vm624_vm13, %v1547_v17, %v621_v28 }
 0x1e7   : > { %v1577_v54 = vmul.f32 %v600_v50, %v569_v48  ;;  %v538_v55 = vsel %vm537_vm0, %v1210_v21, %v534_v49  ;;  %v546_v56 = vmul.f32 %v1214_v44, %v1553_v26  ;;  %vm551_vm6 = vweird.f32 %v1214_v44 }
 0x1e8   : > { %v543_v57 = vsel %vm540_vm3, %v542_v51, %v538_v55  ;;  %vm612_vm7 = vcmp.eq.f32.partialorder %v611_v34, 8.507059e+37  ;;  %vm552_vm9 = vmor %vm550_vm8, %vm551_vm6  ;;  %v626_v21 = vand.u32 2147483647, %v1528_v0 }
 0x1e9   : > { %v633_v59 = vmul.f32 %v1577_v54, %v1577_v54  ;;  %v562_v60 = vsub.f32 %v1531_v6, %v543_v57  ;;  %v547_v2 = vsub.f32 1.0, %v546_v56  ;;  %v615_v63 = vsel %vm612_vm7, %v614_v8, %v610_v41 }
 0x1ea   : > { %v1624_v30 = vsel %vm419_vm2, 0.0, %v1577_v54  ;;  %vm627_vm14 = vcmp.eq.f32.partialorder %v626_v21, 8.507059e+37 }
 0x1eb   : > { %v639_v6 = vsel %vm325_vm1, %v633_v59, 0.0  ;;  %v566_v7 = vmul.f32 0.5, %v562_v60  ;;  %v548_v62 = vmul.f32 %v1214_v44, %v547_v2  ;;  %v713_v32 = vmul.f32 %v1624_v30, %v1624_v30 }
 0x1ec   : > { %640 = vadd.xlane.f32.xlu2 %v639_v6 }
 0x1ed   : > { %v570_v10 = vmul.f32 %v566_v7, %v1466_v40  ;;  %v549_v9 = vadd.f32 %v1214_v44, %v548_v62  ;;  %v628_v40 = vand.u32 2147483648, %v1528_v0  ;;  %v719_v36 = vsel %vm325_vm1, %v713_v32, 0.0 }
 0x1ef   : > { %v1609_v14 = vmul.f32 %v615_v63, %v570_v10  ;;  %v553_v15 = vsel %vm552_vm9, %v1214_v44, %v549_v9  ;;  %v629_v29 = vor.u32 1.1754944e-38, %v628_v40  ;;  %v1336_v10 = vmov 0  }
 0x1f0   : > { %v558_v16 = vsel %vm555_vm11, %v557_v13, %v553_v15  ;;  %1179 = vset.pattern.permute.xlu0 %v1336_v10  ;;  %1180 = vset.pattern.permute.xlu1 %v1336_v10 }
 0x1f1   : > { %v634_v19 = vmul.f32 %v1609_v14, %v1609_v14  ;;  %v563_v20 = vsub.f32 %v1553_v26, %v558_v16  ;;  %v630_v0 = vsel %vm627_vm14, %v629_v29, %v625_v27  ;;  %v1646_v38 = vsel %vm419_vm2, 0.0, %v1609_v14  ;;  %1181 = vset.pattern.permute.xlu2 %v1336_v10 }
 0x1f2   : > { %v714_v39 = vmul.f32 %v1646_v38, %v1646_v38 }
 0x1f3   : > { %v642_v22 = vsel %vm325_vm1, %v634_v19, 0.0  ;;  %v567_v25 = vmul.f32 0.5, %v563_v20 }
 0x1f4   : > { %643 = vadd.xlane.f32.xlu0 %v642_v22  ;;  %717 = vadd.xlane.f32.xlu2 %v716_v23  ;;  %v722_v18 = vsel %vm325_vm1, %v714_v39, 0.0 }
 0x1f5   : > { %v571_v26 = vmul.f32 %v567_v25, %v1473_v46 }
 0x1f7   : > { %v1627_v31 = vmul.f32 %v630_v0, %v571_v26 }
 0x1f9   : > { %v635_v17 = vmul.f32 %v1627_v31, %v1627_v31  ;;  %v1636_v33 = vsel %vm419_vm2, 0.0, %v1627_v31 }
 0x1fa   : > { %v715_v35 = vmul.f32 %v1636_v33, %v1636_v33 }
 0x1fb   : > { %v645_v46 = vsel %vm325_vm1, %v635_v17, 0.0 }
 0x1fc   : > { %646 = vadd.xlane.f32.xlu1 %v645_v46  ;;  %720 = vadd.xlane.f32.xlu0 %v719_v36  ;;  %v725_v37 = vsel %vm325_vm1, %v715_v35, 0.0 }
 0x1fd   : > { %726 = vadd.xlane.f32.xlu2 %v725_v37 }
 0x204   : > { %723 = vadd.xlane.f32.xlu1 %v722_v18 }
 0x251   : > { %v638_v42 = vpop.xlane.xlu2 %637 }
 0x252   : > { %v648_v43 = vadd.f32 1.0, %v638_v42 }
 0x254   : > { %v652_v45 = vmax.f32 %v648_v43, 1e-07 }
 0x256   : > { %1215 = vrsqrt.f32 %v652_v45  ;;  %vm663_vm15 = vcmp.eq.f32.partialorder %v652_v45, inf  ;;  %v666_v34 = vand.u32 2147483648, %v652_v45  ;;  %vm665_vm0 = vcmp.eq.f32.partialorder %v652_v45, 0.0 }
 0x25c   : > { %v1216_v47 = vpop.eup %1215 }
 0x25d   : > { %v657_v48 = vmul.f32 %v1216_v47, %v652_v45 }
 0x25f   : > { %v641_v49 = vpop.xlane.xlu2 %640  ;;  %v658_v44 = vmul.f32 %v1216_v47, %v657_v48 }
 0x260   : > { %v649_v50 = vadd.f32 1.0, %v641_v49 }
 0x261   : > { %v659_v51 = vmul.f32 0.5, %v658_v44 }
 0x262   : > { %v653_v52 = vmax.f32 %v649_v50, 1e-07 }
 0x263   : > { %v660_v53 = vsub.f32 1.5, %v659_v51 }
 0x264   : > { %1217 = vrsqrt.f32 %v653_v52  ;;  %vm675_vm3 = vcmp.eq.f32.partialorder %v653_v52, inf  ;;  %v678_v19 = vand.u32 2147483648, %v653_v52  ;;  %vm677_vm4 = vcmp.eq.f32.partialorder %v653_v52, 0.0 }
 0x265   : > { %v661_v55 = vmul.f32 %v1216_v47, %v660_v53 }
 0x267   : > { %v644_v56 = vpop.xlane.xlu0 %643  ;;  %v662_v57 = vmul.f32 %v661_v55, %v652_v45 }
 0x268   : > { %v650_v58 = vadd.f32 1.0, %v644_v56 }
 0x269   : > { %v664_v59 = vsel %vm663_vm15, %v652_v45, %v662_v57 }
 0x26a   : > { %v1218_v60 = vpop.eup %1217  ;;  %v667_v61 = vsel %vm665_vm0, %v666_v34, %v664_v59  ;;  %v654_v2 = vmax.f32 %v650_v58, 1e-07 }
 0x26b   : > { %v704_v41 = vsel %vm419_vm2, %v667_v61, %v1538_v11  ;;  %v669_v3 = vmul.f32 %v1218_v60, %v653_v52 }
 0x26c   : > { %v1654_v4 = vmax.f32 %v704_v41, 1.0000001  ;;  %1219 = vrsqrt.f32 %v654_v2  ;;  %vm687_vm5 = vcmp.eq.f32.partialorder %v654_v2, inf  ;;  %v690_v43 = vand.u32 2147483648, %v654_v2 }
 0x26d   : > { %v670_v5 = vmul.f32 %v1218_v60, %v669_v3  ;;  %vm689_vm6 = vcmp.eq.f32.partialorder %v654_v2, 0.0 }
 0x26e   : > { %v784_v6 = vmul.f32 %v1654_v4, %v1654_v4 }
 0x26f   : > { %v647_v7 = vpop.xlane.xlu1 %646  ;;  %v671_v62 = vmul.f32 0.5, %v670_v5 }
 0x270   : > { %v651_v8 = vadd.f32 1.0, %v647_v7  ;;  %v1101_v63 = vadd.f32 -1.0, %v784_v6 }
 0x271   : > { %v672_v11 = vsub.f32 1.5, %v671_v62 }
 0x272   : > { %v1658_v9 = vmax.f32 %v651_v8, 1e-07  ;;  %v1220_v12 = vpop.eup %1219  ;;  %v792_v13 = vmax.f32 %v1101_v63, 1e-15 }
 0x273   : > { %v681_v15 = vmul.f32 %v1220_v12, %v654_v2  ;;  %v673_v28 = vmul.f32 %v1218_v60, %v672_v11 }
 0x274   : > { %1221 = vrsqrt.f32 %v1658_v9  ;;  %vm803_vm7 = vcmp.eq.f32.partialorder %v792_v13, inf  ;;  %v806_v53 = vand.u32 2147483648, %v792_v13  ;;  %vm805_vm8 = vcmp.eq.f32.partialorder %v792_v13, 0.0 }
 0x275   : > { %1223 = vrsqrt.f32 %v792_v13  ;;  %v674_v16 = vmul.f32 %v673_v28, %v653_v52  ;;  %v682_v40 = vmul.f32 %v1220_v12, %v681_v15  ;;  %vm699_vm9 = vcmp.eq.f32.partialorder %v1658_v9, inf }
 0x276   : > { %v702_v41 = vand.u32 2147483648, %v1658_v9  ;;  %vm701_vm10 = vcmp.eq.f32.partialorder %v1658_v9, 0.0 }
 0x277   : > { %v676_v20 = vsel %vm675_vm3, %v653_v52, %v674_v16  ;;  %v683_v23 = vmul.f32 0.5, %v682_v40 }
 0x278   : > { %v679_v22 = vsel %vm677_vm4, %v678_v19, %v676_v20 }
 0x279   : > { %v705_v25 = vsel %vm419_vm2, %v679_v22, %v1577_v54  ;;  %v684_v0 = vsub.f32 1.5, %v683_v23 }
 0x27a   : > { %v1222_v21 = vpop.eup %1221  ;;  %v1665_v26 = vmax.f32 %v705_v25, 1.0000001 }
 0x27b   : > { %v693_v27 = vmul.f32 %v1222_v21, %v1658_v9  ;;  %v1224_v29 = vpop.eup %1223  ;;  %v685_v46 = vmul.f32 %v1220_v12, %v684_v0 }
 0x27c   : > { %v797_v32 = vmul.f32 %v1224_v29, %v792_v13  ;;  %v785_v35 = vmul.f32 %v1665_v26, %v1665_v26 }
 0x27d   : > { %v694_v17 = vmul.f32 %v1222_v21, %v693_v27  ;;  %v686_v39 = vmul.f32 %v685_v46, %v654_v2 }
 0x27e   : > { %v798_v36 = vmul.f32 %v1224_v29, %v797_v32  ;;  %v1102_v37 = vadd.f32 -1.0, %v785_v35 }
 0x27f   : > { %v695_v18 = vmul.f32 0.5, %v694_v17  ;;  %v688_v45 = vsel %vm687_vm5, %v654_v2, %v686_v39 }
 0x280   : > { %v799_v42 = vmul.f32 0.5, %v798_v36  ;;  %v793_v54 = vmax.f32 %v1102_v37, 1e-15  ;;  %v691_v48 = vsel %vm689_vm6, %v690_v43, %v688_v45 }
 0x281   : > { %v696_v49 = vsub.f32 1.5, %v695_v18  ;;  %v706_v50 = vsel %vm419_vm2, %v691_v48, %v1609_v14 }
 0x282   : > { %v800_v47 = vsub.f32 1.5, %v799_v42  ;;  %1225 = vrsqrt.f32 %v793_v54  ;;  %v782_v52 = vmax.f32 %v706_v50, 1.0000001  ;;  %vm815_vm11 = vcmp.eq.f32.partialorder %v793_v54, inf }
 0x283   : > { %v697_v55 = vmul.f32 %v1222_v21, %v696_v49  ;;  %v818_v16 = vand.u32 2147483648, %v793_v54  ;;  %vm817_vm12 = vcmp.eq.f32.partialorder %v793_v54, 0.0 }
 0x284   : > { %v801_v44 = vmul.f32 %v1224_v29, %v800_v47  ;;  %v786_v57 = vmul.f32 %v782_v52, %v782_v52 }
 0x285   : > { %v698_v59 = vmul.f32 %v697_v55, %v1658_v9  ;;  %v724_v55 = vpop.xlane.xlu1 %723 }
 0x286   : > { %v802_v51 = vmul.f32 %v801_v44, %v792_v13  ;;  %v1103_v2 = vadd.f32 -1.0, %v786_v57  ;;  %vm759_vm4 = vcmp.eq.f32.partialorder %v724_v55, inf  ;;  %vm761_vm6 = vcmp.eq.f32.partialorder %v724_v55, 0.0 }
 0x287   : > { %v700_v14 = vsel %vm699_vm9, %v1658_v9, %v698_v59 }
 0x288   : > { %v804_v56 = vsel %vm803_vm7, %v792_v13, %v802_v51  ;;  %v1226_v34 = vpop.eup %1225  ;;  %v794_v5 = vmax.f32 %v1103_v2, 1e-15  ;;  %v703_v6 = vsel %vm701_vm10, %v702_v41, %v700_v14 }
 0x289   : > { %v807_v58 = vsel %vm805_vm8, %v806_v53, %v804_v56  ;;  %v809_v61 = vmul.f32 %v1226_v34, %v793_v54  ;;  %v718_v53 = vpop.xlane.xlu2 %717 }
 0x28a   : > { %v844_v60 = vadd.f32 %v807_v58, %v1654_v4  ;;  %v707_v4 = vsel %vm419_vm2, %v703_v6, %v1627_v31  ;;  %vm827_vm13 = vcmp.eq.f32.partialorder %v794_v5, inf  ;;  %v830_v35 = vand.u32 2147483648, %v794_v5  ;;  %v721_v58 = vpop.xlane.xlu0 %720 }
 0x28b   : > { %v810_v3 = vmul.f32 %v1226_v34, %v809_v61  ;;  %v783_v8 = vmax.f32 %v707_v4, 1.0000001  ;;  %vm829_vm14 = vcmp.eq.f32.partialorder %v794_v5, 0.0  ;;  %vm735_vm3 = vcmp.eq.f32.partialorder %v718_v53, inf }
 0x28c   : > { %1227 = vlog2.f32 %v844_v60  ;;  %vm737_vm5 = vcmp.eq.f32.partialorder %v718_v53, 0.0  ;;  %vm747_vm8 = vcmp.eq.f32.partialorder %v721_v58, inf  ;;  %vm749_vm10 = vcmp.eq.f32.partialorder %v721_v58, 0.0 }
 0x28d   : > { %v811_v7 = vmul.f32 0.5, %v810_v3  ;;  %1229 = vrsqrt.f32 %v794_v5  ;;  %v787_v12 = vmul.f32 %v783_v8, %v783_v8 }
 0x28f   : > { %v812_v62 = vsub.f32 1.5, %v811_v7  ;;  %v1104_v15 = vadd.f32 -1.0, %v787_v12 }
 0x291   : > { %v813_v63 = vmul.f32 %v1226_v34, %v812_v62  ;;  %v795_v19 = vmax.f32 %v1104_v15, 1e-15  ;;  %v727_v57 = vpop.xlane.xlu2 %726 }
 0x292   : > { %v1228_v10 = vpop.eup %1227  ;;  %vm771_vm7 = vcmp.eq.f32.partialorder %v727_v57, inf  ;;  %vm773_vm9 = vcmp.eq.f32.partialorder %v727_v57, 0.0 }
 0x293   : > { %v849_v11 = vmul.f32 0.6931472, %v1228_v10  ;;  %v814_v13 = vmul.f32 %v813_v63, %v793_v54  ;;  %v1230_v28 = vpop.eup %1229  ;;  %1231 = vrsqrt.f32 %v795_v19  ;;  %vm839_vm15 = vcmp.eq.f32.partialorder %v795_v19, inf }
 0x294   : > { %v821_v40 = vmul.f32 %v1230_v28, %v794_v5  ;;  %vm841_vm0 = vcmp.eq.f32.partialorder %v795_v19, 0.0 }
 0x295   : > { %858 = vperm.xlu0 %1179, %v849_v11   ;;  %v816_v9 = vsel %vm815_vm11, %v793_v54, %v814_v13  ;;  %v842_v54 = vand.u32 2147483648, %v795_v19 }
 0x296   : > { %v819_v20 = vsel %vm817_vm12, %v818_v16, %v816_v9  ;;  %v822_v31 = vmul.f32 %v1230_v28, %v821_v40  ;;  %v738_v9 = vand.u32 2147483648, %v718_v53 }
 0x297   : > { %v845_v21 = vadd.f32 %v819_v20, %v1665_v26 }
 0x298   : > { %v823_v22 = vmul.f32 0.5, %v822_v31  ;;  %v762_v31 = vand.u32 2147483648, %v724_v55 }
 0x299   : > { %1233 = vlog2.f32 %v845_v21  ;;  %v1232_v25 = vpop.eup %1231 }
 0x29a   : > { %v824_v23 = vsub.f32 1.5, %v823_v22  ;;  %v833_v29 = vmul.f32 %v1232_v25, %v795_v19 }
 0x29c   : > { %v825_v27 = vmul.f32 %v1230_v28, %v824_v23  ;;  %v834_v46 = vmul.f32 %v1232_v25, %v833_v29 }
 0x29e   : > { %v826_v32 = vmul.f32 %v825_v27, %v794_v5  ;;  %v835_v39 = vmul.f32 0.5, %v834_v46 }
 0x29f   : > { %v1234_v0 = vpop.eup %1233 }
 0x2a0   : > { %v851_v17 = vmul.f32 0.6931472, %v1234_v0  ;;  %v828_v36 = vsel %vm827_vm13, %v794_v5, %v826_v32  ;;  %v836_v18 = vsub.f32 1.5, %v835_v39 }
 0x2a1   : > { %v831_v37 = vsel %vm829_vm14, %v830_v35, %v828_v36  ;;  %v750_v36 = vand.u32 2147483648, %v721_v58 }
 0x2a2   : > { %863 = vperm.xlu1 %1180, %v851_v17   ;;  %v846_v26 = vadd.f32 %v831_v37, %v782_v52  ;;  %v837_v42 = vmul.f32 %v1232_v25, %v836_v18  ;;  %v774_v17 = vand.u32 2147483648, %v727_v57 }
 0x2a4   : > { %1235 = vlog2.f32 %v846_v26  ;;  %v838_v43 = vmul.f32 %v837_v42, %v795_v19 }
 0x2a6   : > { %v840_v45 = vsel %vm839_vm15, %v795_v19, %v838_v43 }
 0x2a7   : > { %v843_v48 = vsel %vm841_vm0, %v842_v54, %v840_v45 }
 0x2a8   : > { %v847_v44 = vadd.f32 %v843_v48, %v783_v8 }
 0x2aa   : > { %v1236_v47 = vpop.eup %1235  ;;  %1237 = vlog2.f32 %v847_v44 }
 0x2ab   : > { %v853_v49 = vmul.f32 0.6931472, %v1236_v47  ;;  %1239 = vrsqrt.f32 %v718_v53 }
 0x2ac   : > { %1241 = vrsqrt.f32 %v724_v55 }
 0x2ad   : > { %868 = vperm.xlu2 %1181, %v853_v49   ;;  %1243 = vrsqrt.f32 %v727_v57 }
 0x2ae   : > { %1245 = vrsqrt.f32 %v721_v58 }
 0x2b0   : > { %v1238_v50 = vpop.eup %1237 }
 0x2b1   : > { %v855_v51 = vmul.f32 0.6931472, %v1238_v50  ;;  %v1240_v52 = vpop.eup %1239 }
 0x2b2   : > { %v1242_v56 = vpop.eup %1241  ;;  %v729_v34 = vmul.f32 %v1240_v52, %v718_v53 }
 0x2b3   : > { %v753_v59 = vmul.f32 %v1242_v56, %v724_v55  ;;  %v1244_v2 = vpop.eup %1243 }
 0x2b4   : > { %v730_v60 = vmul.f32 %v1240_v52, %v729_v34  ;;  %v1246_v3 = vpop.eup %1245  ;;  %v765_v5 = vmul.f32 %v1244_v2, %v727_v57 }
 0x2b5   : > { %873 = vperm.xlu2 %1181, %v855_v51   ;;  %v754_v61 = vmul.f32 %v1242_v56, %v753_v59  ;;  %v741_v7 = vmul.f32 %v1246_v3, %v721_v58 }
 0x2b6   : > { %v731_v14 = vmul.f32 0.5, %v730_v60  ;;  %v766_v62 = vmul.f32 %v1244_v2, %v765_v5 }
 0x2b7   : > { %v755_v41 = vmul.f32 0.5, %v754_v61  ;;  %v742_v10 = vmul.f32 %v1246_v3, %v741_v7 }
 0x2b8   : > { %v732_v6 = vsub.f32 1.5, %v731_v14  ;;  %v767_v12 = vmul.f32 0.5, %v766_v62 }
 0x2b9   : > { %v756_v4 = vsub.f32 1.5, %v755_v41  ;;  %v743_v13 = vmul.f32 0.5, %v742_v10 }
 0x2ba   : > { %v733_v8 = vmul.f32 %v1240_v52, %v732_v6  ;;  %v768_v28 = vsub.f32 1.5, %v767_v12 }
 0x2bb   : > { %v757_v63 = vmul.f32 %v1242_v56, %v756_v4  ;;  %v744_v40 = vsub.f32 1.5, %v743_v13 }
 0x2bc   : > { %v734_v11 = vmul.f32 %v733_v8, %v718_v53  ;;  %v769_v21 = vmul.f32 %v1244_v2, %v768_v28 }
 0x2bd   : > { %v758_v15 = vmul.f32 %v757_v63, %v724_v55  ;;  %v745_v25 = vmul.f32 %v1246_v3, %v744_v40 }
 0x2be   : > { %v736_v16 = vsel %vm735_vm3, %v718_v53, %v734_v11  ;;  %v770_v27 = vmul.f32 %v769_v21, %v727_v57 }
 0x2bf   : > { %v760_v19 = vsel %vm759_vm4, %v724_v55, %v758_v15  ;;  %v739_v20 = vsel %vm737_vm5, %v738_v9, %v736_v16  ;;  %v746_v0 = vmul.f32 %v745_v25, %v721_v58 }
 0x2c0   : > { %v763_v22 = vsel %vm761_vm6, %v762_v31, %v760_v19  ;;  %v776_v23 = vmax.f32 %v739_v20, 1e-15  ;;  %v772_v32 = vsel %vm771_vm7, %v727_v57, %v770_v27 }
 0x2c1   : > { %v778_v29 = vmax.f32 %v763_v22, 1e-15  ;;  %v748_v35 = vsel %vm747_vm8, %v721_v58, %v746_v0  ;;  %v775_v46 = vsel %vm773_vm9, %v774_v17, %v772_v32 }
 0x2c2   : > { %1247 = vrcp.f32 %v776_v23  ;;  %v751_v39 = vsel %vm749_vm10, %v750_v36, %v748_v35  ;;  %v1682_v26 = vmax.f32 %v775_v46, 1e-15  ;;  %vm885_vm12 = vweird.f32 %v776_v23 }
 0x2c3   : > { %1249 = vrcp.f32 %v778_v29  ;;  %v1684_v43 = vmax.f32 %v751_v39, 1e-15  ;;  %v891_v55 = vand.u32 2147483648, %v776_v23  ;;  %v889_v56 = vand.u32 2147483647, %v776_v23 }
 0x2c4   : > { %1251 = vrcp.f32 %v1682_v26  ;;  %v921_v34 = vand.u32 2147483648, %v778_v29  ;;  %vm915_vm15 = vweird.f32 %v778_v29  ;;  %v919_v60 = vand.u32 2147483647, %v778_v29 }
 0x2c5   : > { %1253 = vrcp.f32 %v1684_v43  ;;  %v892_v14 = vor.u32 1.1754944e-38, %v891_v55  ;;  %vm890_vm3 = vcmp.eq.f32.partialorder %v889_v56, 8.507059e+37  ;;  %v936_v28 = vand.u32 2147483648, %v1682_v26 }
 0x2c6   : > { %v922_v7 = vor.u32 1.1754944e-38, %v921_v34  ;;  %vm920_vm4 = vcmp.eq.f32.partialorder %v919_v60, 8.507059e+37  ;;  %vm930_vm6 = vweird.f32 %v1682_v26  ;;  %v934_v16 = vand.u32 2147483647, %v1682_v26 }
 0x2c7   : > { %v906_v19 = vand.u32 2147483648, %v1684_v43  ;;  %v937_v20 = vor.u32 1.1754944e-38, %v936_v28  ;;  %vm900_vm9 = vweird.f32 %v1684_v43  ;;  %v904_v31 = vand.u32 2147483647, %v1684_v43 }
 0x2c8   : > { %v1248_v37 = vpop.eup %1247  ;;  %vm935_vm10 = vcmp.eq.f32.partialorder %v934_v16, 8.507059e+37 }
 0x2c9   : > { %v1250_v18 = vpop.eup %1249  ;;  %v881_v42 = vmul.f32 %v1248_v37, %v776_v23  ;;  %vm886_vm11 = vweird.f32 %v1248_v37  ;;  %v907_v0 = vor.u32 1.1754944e-38, %v906_v19 }
 0x2ca   : > { %v911_v54 = vmul.f32 %v1250_v18, %v778_v29  ;;  %v1688_v48 = vpop.eup %1251  ;;  %vm916_vm13 = vweird.f32 %v1250_v18  ;;  %vm1696_vm14 = vmor %vm885_vm12, %vm886_vm11  ;;  %vm905_vm12 = vcmp.eq.f32.partialorder %v904_v31, 8.507059e+37 }
 0x2cb   : > { %v882_v45 = vsub.f32 1.0, %v881_v42  ;;  %v1690_v50 = vpop.eup %1253  ;;  %v926_v51 = vmul.f32 %v1688_v48, %v1682_v26  ;;  %vm1703_vm0 = vmor %vm915_vm15, %vm916_vm13  ;;  %vm931_vm5 = vweird.f32 %v1688_v48 }
 0x2cc   : > { %v912_v47 = vsub.f32 1.0, %v911_v54  ;;  %v896_v57 = vmul.f32 %v1690_v50, %v1684_v43  ;;  %vm932_vm7 = vmor %vm930_vm6, %vm931_vm5  ;;  %vm901_vm8 = vweird.f32 %v1690_v50 }
 0x2cd   : > { %v883_v49 = vmul.f32 %v1248_v37, %v882_v45  ;;  %v927_v59 = vsub.f32 1.0, %v926_v51  ;;  %vm902_vm11 = vmor %vm900_vm9, %vm901_vm8 }
 0x2ce   : > { %v913_v44 = vmul.f32 %v1250_v18, %v912_v47  ;;  %v897_v6 = vsub.f32 1.0, %v896_v57 }
 0x2cf   : > { %v884_v53 = vadd.f32 %v1248_v37, %v883_v49  ;;  %v928_v8 = vmul.f32 %v1688_v48, %v927_v59 }
 0x2d0   : > { %v914_v52 = vadd.f32 %v1250_v18, %v913_v44 }
 0x2d1   : > { %v888_v61 = vsel %vm1696_vm14, %v1248_v37, %v884_v53  ;;  %v929_v15 = vadd.f32 %v1688_v48, %v928_v8 }
 0x2d2   : > { %v918_v3 = vsel %vm1703_vm0, %v1250_v18, %v914_v52  ;;  %v893_v62 = vsel %vm890_vm3, %v892_v14, %v888_v61 }
 0x2d3   : > { %v923_v12 = vsel %vm920_vm4, %v922_v7, %v918_v3  ;;  %v933_v40 = vsel %vm932_vm7, %v1688_v48, %v929_v15 }
 0x2d4   : > { %v938_v23 = vsel %vm935_vm10, %v937_v20, %v933_v40 }
 0x307   : > { %v859_v41 = vpop.permute.xlu0 %858  ;;  %v869_v4 = vpop.permute.xlu2 %868 }
 0x308   : > { %v876_v5 = vmul.f32 %v859_v41, %v1595_v1  ;;  %v878_v10 = vmul.f32 %v869_v4, %v1646_v38  ;;  %v898_v1 = vmul.f32 %v1690_v50, %v897_v6 }
 0x30a   : > { %v894_v63 = vmul.f32 %v893_v62, %v876_v5  ;;  %v924_v11 = vmul.f32 %v923_v12, %v878_v10  ;;  %v899_v9 = vadd.f32 %v1690_v50, %v898_v1 }
 0x30c   : > { %v940_v13 = vsel %vm419_vm2, 0.0, %v894_v63  ;;  %v942_v38 = vsel %vm419_vm2, 0.0, %v924_v11  ;;  %v903_v25 = vsel %vm902_vm11, %v1690_v50, %v899_v9 }
 0x30d   : > { %944 = vst.msk [vmem:[%s1717_s24] sm:$0xff] %vm325_vm1, %v940_v13  ;;  %v908_v17 = vsel %vm905_vm12, %v907_v0, %v903_v25 }
 0x30e   : > { %946 = vst.msk [vmem:[%s1717_s24 + $0x10] sm:$0xff] %vm325_vm1, %v942_v38 }
 0x30f   : > { %v874_v21 = vpop.permute.xlu2 %873 }
 0x310   : > { %v879_v22 = vmul.f32 %v874_v21, %v1636_v33 }
 0x312   : > { %v939_v27 = vmul.f32 %v938_v23, %v879_v22 }
 0x314   : > { %v864_v29 = vpop.permute.xlu1 %863  ;;  %v943_v33 = vsel %vm419_vm2, 0.0, %v939_v27 }
 0x315   : > { %v877_v32 = vmul.f32 %v864_v29, %v1624_v30  ;;  %947 = vst.msk [vmem:[%s1717_s24 + $0x18] sm:$0xff] %vm325_vm1, %v943_v33 }
 0x317   : > { %v909_v35 = vmul.f32 %v908_v17, %v877_v32 }
 0x319   : > { %v941_v46 = vsel %vm419_vm2, 0.0, %v909_v35 }
 0x31a   : > { %945 = vst.msk [vmem:[%s1717_s24 + $0x8] sm:$0xff] %vm325_vm1, %v941_v46 }
 0x31b   : > { %1282 = shalt.err (!%p1279_p5)
}
 0x31c   : > { %s1337_s21 = smov 128   ;;  %s1338_s22 = smov 8  }
 0x31d   : > { %1120 = dma.vmem_to_hbm [thread:$0]  (%p1404_p4), %s964_s18, 512, %s966_s6, %s949_s7, %s1337_s21, %s1337_s21, %s1338_s22  }
 0x31e PF: > { %p1126_p6 = scmp.ge.s32.totalorder %s1333_s20, 2  ;;  %s980_s24 = sand.u32 1, %s1313_s15  }
 0x31f   : > { %s981_s26 = scalar_lea.sflag [#allocation4], %s980_s24 }
 0x320   : > { %p1123_p7 = pnand %p1126_p6, %p1411_p8 }
 0x322   : > { %p1124_p9 = pneg %p1123_p7 }
 0x324   : > { %1308 = dma.done.wait (%p1124_p9), %s981_s26, 512  }
 0x325   : > { %1310 = vsyncadd (%p1124_p9), %s981_s26, 4294966784  ;;  %s17_s20 = sadd.s32 1, %s1333_s20   ;;  %s1801_s15 = smov %s1317_s16 }
 0x326   : > { %p14_p10 = scmp.ge.s32.totalorder %s17_s20, 4   ;;  %s1802_s16 = smov %s1321_s17 }
 0x327   : > { %s1803_s17 = smov %s1417_s28  ;;  %s1804_s18 = smov %s1329_s19 }
 0x328   : > { %s1805_s19 = smov %s1807_s23  ;;  %16 = sbr.rel (!%p14_p10) target bundleno = 4 (0x4), region = 82 }
 0x32d   :  { %987 = vsyncpa [#allocation4], 1 }
 0x32e   :  { %989 = vsyncpa [#allocation4 + $0x1], 1 }

</bundles_post_ra>
